<compile_context>
chip_gen: v6e
topology: v6e:2x2x1
jax: 0.10.0
libtpu: 0.0.40
codegen_flags: <defaults>
</compile_context>

<pallas_src>
import jax
import jax.numpy as jnp
from jax.experimental import pallas as pl
from jax.experimental.pallas import tpu as pltpu  # noqa: F401  (TPU backend)


def conv2d_silu_kernel(p_ref, w_ref, b_ref, o_ref):
    """p_ref: (Kpad, M)   im2col patches, M lane-dense (VMEM)
       w_ref: (Cout, Kpad) flattened conv weights (VMEM)
       b_ref: (Cout, 1)   bias (VMEM)
       o_ref: (Cout, M)   output, lane-dense over M."""
    # Single merged MXU contraction over the KH*KW*Cin (padded) axis.
    acc = jnp.dot(w_ref[...], p_ref[...], preferred_element_type=jnp.float32)
    acc = acc + b_ref[...]                       # (Cout, 1) broadcasts over lanes
    o_ref[...] = (acc * jax.nn.sigmoid(acc)).astype(o_ref.dtype)


def net_silu_forward(x_nchw, w_oihw, bias, *, padding=(1, 1)):
    """Conv2d(stride=1, dilation=1, groups=1) + SiLU.  NCHW in / NCHW out."""
    ph, pw = padding
    N, Cin, H, W = x_nchw.shape
    Cout, _, KH, KW = w_oihw.shape
    Hp, Wp = H + 2 * ph, W + 2 * pw
    h_out = Hp - KH + 1
    w_out = Wp - KW + 1
    M = N * h_out * w_out
    K = KH * KW * Cin
    Kpad = ((K + 7) // 8) * 8                    # sublane-aligned contraction dim

    # --- glue (fused by jit): pad + im2col into a (K, M) lane-dense matrix ---
    x_pad = jnp.pad(x_nchw, ((0, 0), (0, 0), (ph, ph), (pw, pw)))
    x_cnhw = jnp.transpose(x_pad, (1, 0, 2, 3))  # (Cin, N, Hp, Wp)

    taps = []
    for i in range(KH):                          # k index = (i*KW + j)*Cin + c
        for j in range(KW):
            taps.append(
                x_cnhw[:, :, i:i + h_out, j:j + w_out].reshape(Cin, M))
    patches = jnp.concatenate(taps, axis=0)      # (K, M)
    patches = jnp.pad(patches, ((0, Kpad - K), (0, 0)))

    # weights: (Cout, Cin, KH, KW) -> (Cout, KH, KW, Cin) -> (Cout, K), same k order
    w_mat = jnp.transpose(w_oihw, (0, 2, 3, 1)).reshape(Cout, K)
    w_mat = jnp.pad(w_mat, ((0, 0), (0, Kpad - K)))
    b2 = bias.reshape(Cout, 1)

    out_t = pl.pallas_call(
        conv2d_silu_kernel,
        out_shape=jax.ShapeDtypeStruct((Cout, M), x_nchw.dtype),
        in_specs=[
            pl.BlockSpec((Kpad, M), lambda: (0, 0)),
            pl.BlockSpec((Cout, Kpad), lambda: (0, 0)),
            pl.BlockSpec((Cout, 1), lambda: (0, 0)),
        ],
        out_specs=pl.BlockSpec((Cout, M), lambda: (0, 0)),
    )(patches, w_mat, b2)

    # --- glue: (Cout, M) -> (N, Cout, h_out, w_out) ---
    out = out_t.reshape(Cout, N, h_out, w_out)
    return jnp.transpose(out, (1, 0, 2, 3))


def _reference(x_nchw, w_oihw, bias, *, padding=((1, 1), (1, 1))):
    conv = jax.lax.conv_general_dilated(
        x_nchw, w_oihw, window_strides=(1, 1), padding=padding,
        dimension_numbers=("NCHW", "OIHW", "NCHW"))
    conv = conv + bias[None, :, None, None]
    return conv * jax.nn.sigmoid(conv)


if __name__ == "__main__":
    # Small, deterministic shapes consistent with the module's forward.
    N, IC, H, W = 2, 4, 16, 16
    OC, KH, KW = 8, 3, 3
    PH, PW = 1, 1

    key = jax.random.PRNGKey(0)
    kx, kw_, kb = jax.random.split(key, 3)

    x = jax.random.normal(kx, (N, IC, H, W), dtype=jnp.float32)
    fan_in = IC * KH * KW
    w = jax.random.normal(kw_, (OC, IC, KH, KW), dtype=jnp.float32) / jnp.sqrt(fan_in)
    b = jax.random.normal(kb, (OC,), dtype=jnp.float32) * 0.1

    fwd = jax.jit(net_silu_forward, static_argnames=("padding",))
    out = jax.block_until_ready(fwd(x, w, b, padding=(PH, PW)))

    ref = jax.block_until_ready(
        _reference(x, w, b, padding=((PH, PH), (PW, PW))))
    assert out.shape == (N, OC, H, W), out.shape
    assert jnp.allclose(out, ref, rtol=1e-4, atol=1e-4), \
        f"max abs err = {jnp.max(jnp.abs(out - ref))}"

    print("KERNEL_OK")
</pallas_src>

<mosaic_0001>
module attributes {stable_mosaic.version = 11 : i64} {
  func.func @conv2d_silu_kernel(%arg0: memref<40x512xf32, #tpu.memory_space<vmem>>, %arg1: memref<8x40xf32, #tpu.memory_space<vmem>>, %arg2: memref<8x1xf32, #tpu.memory_space<vmem>>, %arg3: memref<8x512xf32, #tpu.memory_space<vmem>>) attributes {dimension_semantics = [], scalar_prefetch = 0 : i64, scratch_operands = 0 : i64, tpu.core_type = #tpu.core_type<tc>} {
    %c0 = arith.constant 0 : index
    %c0_0 = arith.constant 0 : index
    %0 = vector.load %arg1[%c0, %c0_0] : memref<8x40xf32, #tpu.memory_space<vmem>>, vector<8x40xf32>
    %c0_1 = arith.constant 0 : index
    %c0_2 = arith.constant 0 : index
    %1 = vector.load %arg0[%c0_1, %c0_2] : memref<40x512xf32, #tpu.memory_space<vmem>>, vector<40x512xf32>
    %cst = arith.constant dense<0.000000e+00> : vector<8x512xf32>
    %2 = tpu.matmul %0, %1, %cst {dimension_numbers = #tpu.dot_dimension_numbers<[1], [0], [0], [1], [0, 0, 1, 1], [], []>} : vector<8x40xf32>, vector<40x512xf32>, vector<8x512xf32> -> vector<8x512xf32>
    %c0_3 = arith.constant 0 : index
    %c0_4 = arith.constant 0 : index
    %3 = vector.load %arg2[%c0_3, %c0_4] : memref<8x1xf32, #tpu.memory_space<vmem>>, vector<8x1xf32>
    %4 = vector.broadcast %3 : vector<8x1xf32> to vector<8x512xf32>
    %5 = arith.addf %2, %4 : vector<8x512xf32>
    %6 = arith.negf %5 : vector<8x512xf32>
    %7 = math.exp %6 : vector<8x512xf32>
    %cst_5 = arith.constant 1.000000e+00 : f32
    %8 = vector.broadcast %cst_5 : f32 to vector<8x512xf32>
    %9 = arith.addf %8, %7 : vector<8x512xf32>
    %10 = arith.divf %8, %9 : vector<8x512xf32>
    %11 = arith.mulf %5, %10 : vector<8x512xf32>
    %c0_6 = arith.constant 0 : index
    %c0_7 = arith.constant 0 : index
    %12 = vector.load %arg3[%c0_6, %c0_7] : memref<8x512xf32, #tpu.memory_space<vmem>>, vector<8x512xf32>
    tpu.vector_store %arg3[%c0_6, %c0_7], %11 {strides = array<i32>} : memref<8x512xf32, #tpu.memory_space<vmem>>, vector<8x512xf32>,
    return
  }
}

</mosaic_0001>

<bundles_post_ra>
// kernel: net_silu_forward.1
= control target key start
LH: loop header
LB: loop body
LE: loop exit
PB: predicated region body
PF: predicated region fallthrough
CT: control target
= control target key end

     0   :  { %v248_v3 = vmov 0.0   ;;  %vm41_vm0 = vcmask 326656   ;;  %v249_v23 = vmov 0   ;;  %s348_s0 = inlined_call_operand.vmem [shape: f32[40,512], index: 0, kind: input, shape index: {}]   ;;  %s349_s1 = inlined_call_operand.vmem [shape: f32[8,40], index: 1, kind: input, shape index: {}]   ;;  %s350_s2 = inlined_call_operand.vmem [shape: f32[8,1], index: 2, kind: input, shape index: {}]   ;;  %s351_s3 = inlined_call_operand.vmem [shape: f32[8,512], index: 3, kind: output, shape index: {}]  }
   0x1   :  { %v32_v0 = vld [vmem:[%s348_s0 + $0x88] sm:$0xff]  ;;  %v34_v1 = vld [vmem:[%s348_s0 + $0x98] sm:$0xff]  ;;  %v31_v2 = vld [vmem:[%s348_s0 + $0x80] sm:$0xff]  ;;  %109 = vmatprep.mubr.f32.mxu0 %v248_v3  ;;  %180 = vmatprep.mubr.f32.mxu1 %v248_v3 }
   0x2   :  { %67 = vmatprep.subr.mxu0 %v32_v0  ;;  %138 = vmatprep.subr.mxu1 %v34_v1  ;;  %v33_v4 = vld [vmem:[%s348_s0 + $0x90] sm:$0xff]  ;;  %v28_v5 = vld [vmem:[%s348_s0 + $0x68] sm:$0xff]  ;;  %v30_v6 = vld [vmem:[%s348_s0 + $0x78] sm:$0xff] }
   0x3   :  { %68 = vmatpush1.msra.mxu0 %v31_v2  ;;  %139 = vmatpush1.msra.mxu1 %v33_v4  ;;  %v27_v7 = vld [vmem:[%s348_s0 + $0x60] sm:$0xff]  ;;  %v29_v8 = vld [vmem:[%s348_s0 + $0x70] sm:$0xff]  ;;  %v24_v9 = vld [vmem:[%s348_s0 + $0x48] sm:$0xff] }
   0x4   :  { %69 = vmatprep.subr.mxu0 %v28_v5  ;;  %140 = vmatprep.subr.mxu1 %v30_v6  ;;  %v26_v10 = vld [vmem:[%s348_s0 + $0x58] sm:$0xff]  ;;  %v23_v11 = vld [vmem:[%s348_s0 + $0x40] sm:$0xff]  ;;  %v25_v12 = vld [vmem:[%s348_s0 + $0x50] sm:$0xff] }
   0x5   :  { %70 = vmatpush1.msra.mxu0 %v27_v7  ;;  %141 = vmatpush1.msra.mxu1 %v29_v8  ;;  %v20_v13 = vld [vmem:[%s348_s0 + $0x28] sm:$0xff]  ;;  %v22_v14 = vld [vmem:[%s348_s0 + $0x38] sm:$0xff]  ;;  %v19_v15 = vld [vmem:[%s348_s0 + $0x20] sm:$0xff] }
   0x6   :  { %71 = vmatprep.subr.mxu0 %v24_v9  ;;  %142 = vmatprep.subr.mxu1 %v26_v10  ;;  %v21_v16 = vld [vmem:[%s348_s0 + $0x30] sm:$0xff]  ;;  %v16_v17 = vld [vmem:[%s348_s0 + $0x8] sm:$0xff]  ;;  %v18_v18 = vld [vmem:[%s348_s0 + $0x18] sm:$0xff] }
   0x7   :  { %72 = vmatpush1.msra.mxu0 %v23_v11  ;;  %143 = vmatpush1.msra.mxu1 %v25_v12  ;;  %v15_v19 = vld [vmem:[%s348_s0] sm:$0xff]  ;;  %v17_v20 = vld [vmem:[%s348_s0 + $0x10] sm:$0xff] }
   0x8   :  { %73 = vmatprep.subr.mxu0 %v20_v13  ;;  %144 = vmatprep.subr.mxu1 %v22_v14  ;;  %v14_v21 = vld [vmem:[%s349_s1] sm:$0xff] }
   0x9   :  { %74 = vmatpush1.msra.mxu0 %v19_v15  ;;  %145 = vmatpush1.msra.mxu1 %v21_v16  ;;  %v35_v22 = vld [vmem:[%s350_s2] sm:$0xff] }
   0xa   :  { %75 = vmatprep.subr.mxu0 %v16_v17  ;;  %146 = vmatprep.subr.mxu1 %v18_v18 }
   0xb   :  { %76 = vmatpush1.msra.mxu0 %v15_v19  ;;  %147 = vmatpush1.msra.mxu1 %v17_v20 }
   0xc   :  { %223 = vmatmul.mubr.msk.f32.vlgmr.msra.gmra.mxu0 %vm41_vm0, %v14_v21  ;;  %224 = vmatmul.mubr.msk.f32.vlgmr.msra.gmra.mxu1 %vm41_vm0, %v14_v21 }
   0xd   :  { %231 = vset.pattern.permute.xlu0 %v249_v23 }
   0xe   :  { %38 = vperm.xlu0 %231, %v35_v22  }
  0x89   :  { %v39_v24 = vpop.permute.xlu0 %38 }
  0xcc   :  { %v111_v25 = vpop.f32.mrf.mxu0  ;;  %v182_v26 = vpop.f32.mrf.mxu1 }
  0xcd   :  { %v112_v27 = vadd.f32 %v111_v25, %v39_v24  ;;  %v183_v28 = vadd.f32 %v182_v26, %v39_v24 }
  0xce   :  { %v113_v29 = vpop.f32.mrf.mxu0  ;;  %v184_v30 = vpop.f32.mrf.mxu1 }
  0xcf   :  { %v225_v31 = vmul.f32 -1.442695, %v112_v27  ;;  %v227_v32 = vmul.f32 -1.442695, %v183_v28  ;;  %v114_v33 = vadd.f32 %v113_v29, %v39_v24  ;;  %v185_v34 = vadd.f32 %v184_v30, %v39_v24 }
  0xd1   :  { %232 = vpow2.f32 %v225_v31  ;;  %v226_v35 = vmul.f32 -1.442695, %v114_v33  ;;  %v228_v36 = vmul.f32 -1.442695, %v185_v34 }
  0xd2   :  { %234 = vpow2.f32 %v227_v32 }
  0xd3   :  { %236 = vpow2.f32 %v226_v35 }
  0xd4   :  { %238 = vpow2.f32 %v228_v36 }
  0xde   :  { %v233_v37 = vpop.eup %232 }
  0xdf   :  { %v235_v38 = vpop.eup %234  ;;  %v199_v39 = vadd.f32 1.0, %v233_v37 }
  0xe0   :  { %v237_v40 = vpop.eup %236  ;;  %v201_v41 = vadd.f32 1.0, %v235_v38 }
  0xe1   :  { %v239_v42 = vpop.eup %238  ;;  %240 = vrcp.f32 %v199_v39  ;;  %v200_v43 = vadd.f32 1.0, %v237_v40 }
  0xe2   :  { %242 = vrcp.f32 %v201_v41  ;;  %v202_v44 = vadd.f32 1.0, %v239_v42 }
  0xe3   :  { %244 = vrcp.f32 %v200_v43 }
  0xe4   :  { %246 = vrcp.f32 %v202_v44 }
  0xee   :  { %v241_v45 = vpop.eup %240 }
  0xef   :  { %v243_v46 = vpop.eup %242  ;;  %v211_v47 = vmul.f32 %v241_v45, %v112_v27 }
  0xf0   :  { %v245_v48 = vpop.eup %244  ;;  %v213_v49 = vmul.f32 %v243_v46, %v183_v28 }
  0xf1   :  { %v247_v50 = vpop.eup %246  ;;  %215 = vst [vmem:[%s351_s3] sm:$0xff] %v211_v47  ;;  %v212_v51 = vmul.f32 %v245_v48, %v114_v33 }
  0xf2   :  { %217 = vst [vmem:[%s351_s3 + $0x10] sm:$0xff] %v213_v49  ;;  %v214_v52 = vmul.f32 %v247_v50, %v185_v34 }
  0xf3   :  { %216 = vst [vmem:[%s351_s3 + $0x8] sm:$0xff] %v212_v51 }
  0xf4   :  { %218 = vst [vmem:[%s351_s3 + $0x18] sm:$0xff] %v214_v52 }

</bundles_post_ra>
